<compile_context>
chip_gen: v6e
topology: v6e:2x2x1
jax: 0.10.0
libtpu: 0.0.40
codegen_flags: <defaults>
</compile_context>

<pallas_src>
import math

import jax
import jax.numpy as jnp
from jax.experimental import pallas as pl
from jax.experimental.pallas import tpu as pltpu


def _block_budget_bytes() -> int:
    """Per-logical-block byte budget, gated on the generation's VMEM size.

    With x / pe / out each at most double-buffered the pipeline holds ~6 blocks,
    so 6 * budget stays below the explicit 32 MiB scoped-VMEM limit we set.
    """
    try:
        vmem = pltpu.get_tpu_info().vmem_capacity_bytes
    except Exception:
        vmem = 128 << 20
    if vmem <= (64 << 20):      # v7x: 64 MiB physical VMEM per TensorCore
        return 2 << 20
    return 4 << 20              # v5e / v6e: 128 MiB physical VMEM


_VMEM_LIMIT_BYTES = 32 << 20    # explicit scoped limit, safe on every generation


def _build_pe(d_model: int, max_len: int = 5000, dtype=jnp.float32) -> jnp.ndarray:
    """Sinusoidal positional-encoding table, shape (max_len, d_model).

    Built once at init (the PyTorch module registers it as a buffer); keep it in
    the model dtype so the forward pass does no per-call cast.
    """
    position = jnp.arange(0, max_len, dtype=jnp.float32)[:, None]
    div_term = jnp.exp(
        jnp.arange(0, d_model, 2, dtype=jnp.float32) * (-math.log(10000.0) / d_model)
    )
    angles = position * div_term
    pe = jnp.zeros((max_len, d_model), dtype=jnp.float32)
    pe = pe.at[:, 0::2].set(jnp.sin(angles))
    pe = pe.at[:, 1::2].set(jnp.cos(angles)[:, : d_model // 2])
    return pe.astype(dtype)


def _add_pe_kernel(x_ref, pe_ref, o_ref):
    # 3-D path : x (tB, tS, D) + pe (tS, D)  -> broadcast over the batch tile
    # flat path: x (B, tL)     + pe (1, tL)  -> broadcast over sublanes
    o_ref[...] = (x_ref[...] + pe_ref[...]).astype(o_ref.dtype)


def _round_down(v: int, m: int) -> int:
    return max(m, (v // m) * m)


def _round_up(v: int, m: int) -> int:
    return ((v + m - 1) // m) * m


def positional_encoding_forward(x: jnp.ndarray, pe_table: jnp.ndarray,
                                *, donate_x: bool = False) -> jnp.ndarray:
    """x: (B, S, D); pe_table: (max_len, D) in the model dtype. Returns x + pe[:S]."""
    B, S, D = x.shape
    max_len = pe_table.shape[0]
    if S > max_len:
        raise ValueError(f"sequence length {S} exceeds positional-encoding max_len {max_len}")
    if pe_table.dtype != x.dtype:
        # Slow path: keep the registered buffer in the model dtype to avoid this.
        pe_table = pe_table.astype(x.dtype)

    itemsize = jnp.dtype(x.dtype).itemsize
    budget = _block_budget_bytes()
    io_aliases = {0: 0} if donate_x else {}
    cost = pl.CostEstimate(
        flops=B * S * D,
        transcendentals=0,
        bytes_accessed=(2 * B * S * D + S * D) * itemsize,
    )

    if D % 128 == 0:
        # ---- 3-D path: lane-dense already; tile S and fold a batch tile in. ----
        sublane = {4: 8, 2: 16, 1: 32}.get(itemsize, 8)
        rows_budget = max(sublane, budget // (D * itemsize))
        if rows_budget >= S:
            tS = _round_up(S, sublane)                 # whole sequence in one S-tile
            tB = max(1, min(B, rows_budget // tS))     # fold batch to reach the budget
        else:
            tS = _round_down(rows_budget, sublane)
            tB = 1
        grid = (pl.cdiv(S, tS), pl.cdiv(B, tB))        # batch innermost -> pe resident

        return pl.pallas_call(
            _add_pe_kernel,
            out_shape=jax.ShapeDtypeStruct((B, S, D), x.dtype),
            grid_spec=pl.GridSpec(
                grid=grid,
                in_specs=[
                    pl.BlockSpec((tB, tS, D), lambda s, b: (b, s, 0)),
                    # Full (max_len, D) table: only the first ceil(S/tS) blocks are
                    # ever DMA'd, so there is no per-call slice/cast HBM pass.
                    pl.BlockSpec((tS, D), lambda s, b: (s, 0)),
                ],
                out_specs=pl.BlockSpec((tB, tS, D), lambda s, b: (b, s, 0)),
            ),
            compiler_params=pltpu.CompilerParams(
                dimension_semantics=("parallel", "parallel"),
                vmem_limit_bytes=_VMEM_LIMIT_BYTES,
            ),
            cost_estimate=cost,
            input_output_aliases=io_aliases,
        )(x, pe_table)

    # ---- Lane-dense flattened path (D not a multiple of 128, e.g. D=32). ----
    # Flatten (S, D) -> L so the last dim maps densely onto the 128 lanes;
    # pe flattens the same way, so the elementwise add stays correct.
    L = S * D
    x2 = x.reshape(B, L)
    pe2 = pe_table[:S, :].reshape(1, L)                # same dtype: no cast pass

    cols_budget = max(128, budget // (max(B, 8) * itemsize))
    tL = L if cols_budget >= L else _round_down(cols_budget, 128)
    grid = (pl.cdiv(L, tL),)

    out2 = pl.pallas_call(
        _add_pe_kernel,
        out_shape=jax.ShapeDtypeStruct((B, L), x.dtype),
        grid_spec=pl.GridSpec(
            grid=grid,
            in_specs=[
                pl.BlockSpec((B, tL), lambda l: (0, l)),
                pl.BlockSpec((1, tL), lambda l: (0, l)),
            ],
            out_specs=pl.BlockSpec((B, tL), lambda l: (0, l)),
        ),
        compiler_params=pltpu.CompilerParams(
            dimension_semantics=("parallel",),
            vmem_limit_bytes=_VMEM_LIMIT_BYTES,
        ),
        cost_estimate=cost,
        input_output_aliases=io_aliases,
    )(x2, pe2)
    return out2.reshape(B, S, D)


if __name__ == "__main__":
    key = jax.random.PRNGKey(0)
    max_len = 5000

    # Test 1: module's demo shape (D=32 -> lane-dense flattened path).
    batch, seq, d_model = 2, 8, 32
    k1, k2 = jax.random.split(key)
    x1 = jax.random.normal(k1, (batch, seq, d_model), dtype=jnp.float32)
    pe1 = _build_pe(d_model, max_len)                  # built once, model dtype
    out1 = jax.block_until_ready(positional_encoding_forward(x1, pe1))
    ref1 = x1 + pe1[None, :seq, :]
    assert out1.shape == (batch, seq, d_model)
    assert jnp.allclose(out1, ref1, atol=1e-6), "mismatch vs reference (flattened path)"

    # Test 2: lane-aligned hidden size (D=128 -> 3-D path, batch folded into the block).
    batch2, seq2, d_model2 = 2, 16, 128
    x2 = jax.random.normal(k2, (batch2, seq2, d_model2), dtype=jnp.float32)
    pe2 = _build_pe(d_model2, max_len)
    out2 = jax.block_until_ready(positional_encoding_forward(x2, pe2))
    ref2 = x2 + pe2[None, :seq2, :]
    assert out2.shape == (batch2, seq2, d_model2)
    assert jnp.allclose(out2, ref2, atol=1e-6), "mismatch vs reference (3-D path)"

    print("KERNEL_OK")
</pallas_src>

<mosaic_0001>
module attributes {stable_mosaic.version = 11 : i64} {
  func.func @_add_pe_kernel(%arg0: i32, %arg1: memref<2x256xf32, #tpu.memory_space<vmem>>, %arg2: memref<1x256xf32, #tpu.memory_space<vmem>>, %arg3: memref<2x256xf32, #tpu.memory_space<vmem>>) attributes {dimension_semantics = [#tpu.dimension_semantics<parallel>], iteration_bounds = array<i64: 1>, scalar_prefetch = 0 : i64, scratch_operands = 0 : i64, tpu.core_type = #tpu.core_type<tc>, window_params = [{transform_indices = @transform_0, window_bounds = array<i64: 2, 256>}, {transform_indices = @transform_1, window_bounds = array<i64: 1, 256>}, {transform_indices = @transform_2, window_bounds = array<i64: 2, 256>}]} {
    %c0 = arith.constant 0 : index
    %c0_0 = arith.constant 0 : index
    %0 = vector.load %arg1[%c0, %c0_0] : memref<2x256xf32, #tpu.memory_space<vmem>>, vector<2x256xf32>
    %c0_1 = arith.constant 0 : index
    %c0_2 = arith.constant 0 : index
    %1 = vector.load %arg2[%c0_1, %c0_2] : memref<1x256xf32, #tpu.memory_space<vmem>>, vector<1x256xf32>
    %2 = vector.broadcast %1 : vector<1x256xf32> to vector<2x256xf32>
    %3 = arith.addf %0, %2 : vector<2x256xf32>
    %c0_3 = arith.constant 0 : index
    %c0_4 = arith.constant 0 : index
    %4 = vector.load %arg3[%c0_3, %c0_4] : memref<2x256xf32, #tpu.memory_space<vmem>>, vector<2x256xf32>
    tpu.vector_store %arg3[%c0_3, %c0_4], %3 {strides = array<i32>} : memref<2x256xf32, #tpu.memory_space<vmem>>, vector<2x256xf32>,
    return
  }
  func.func @transform_0(%arg0: i32) -> (i32, i32) {
    %c0_i32 = arith.constant 0 : i32
    %c0_i32_0 = arith.constant 0 : i32
    return %c0_i32, %arg0 : i32, i32
  }
  func.func @transform_1(%arg0: i32) -> (i32, i32) {
    %c0_i32 = arith.constant 0 : i32
    %c0_i32_0 = arith.constant 0 : i32
    return %c0_i32, %arg0 : i32, i32
  }
  func.func @transform_2(%arg0: i32) -> (i32, i32) {
    %c0_i32 = arith.constant 0 : i32
    %c0_i32_0 = arith.constant 0 : i32
    return %c0_i32, %arg0 : i32, i32
  }
}

</mosaic_0001>

<bundles_post_ra>
// kernel: tpu_custom_call.1
= control target key start
LH: loop header
LB: loop body
LE: loop exit
PB: predicated region body
PF: predicated region fallthrough
CT: control target
= control target key end

     0   :  { %7 = vsyncpa [#allocation3], 0  ;;  %s172_s0 = inlined_call_operand.hbm [shape: f32[2,256], index: 0, kind: input, shape index: {}]   ;;  %s173_s1 = inlined_call_operand.hbm [shape: f32[1,256], index: 1, kind: input, shape index: {}]   ;;  %s174_s2 = inlined_call_operand.hbm [shape: f32[2,256], index: 2, kind: output, shape index: {}]  }
   0x1   :  { %8 = vsyncpa [#allocation6], 0 }
   0x2   :  { %9 = vsyncpa [#allocation4], 0  ;;  %s144_s9 = smov [#allocation2]   ;;  %s145_s11 = smov [#allocation5]  }
   0x3   :  { %s16_s10 = sshll.u32 %s144_s9, 4  ;;  %s26_s12 = sshll.u32 %s145_s11, 4  ;;  %s17_s10 = int_to_ptr.vmem [resolvable:$true] %s16_s10  ;;  %s27_s12 = int_to_ptr.vmem [resolvable:$true] %s26_s12 }
   0x4   :  { %s86_s13 = scalar_lea.vmem %s17_s10, 64  ;;  %p91_p1 = scmp.lt.s32.totalorder %s17_s10, %s17_s10 }
   0x5   :  { %p87_p0 = scmp.ne.s32.totalorder %s17_s10, %s86_s13  ;;  %p92_p2 = scmp.lt.s32.totalorder %s86_s13, %s86_s13 }
   0x7   :  { %p93_p3 = por %p92_p2, %p91_p1 }
   0x9   :  { %p94_p4 = pnand %p93_p3, %p87_p0 }
   0xb   :  { %97 = shalt.err (!%p94_p4)
}
   0xc   :  { %19 = dma.hbm_to_vmem [thread:$0]  %s172_s0, 64, %s17_s10, [#allocation3]  }
   0xd   :  { %s106_s16 = scalar_lea.vmem %s27_s12, 32  ;;  %p111_p6 = scmp.lt.s32.totalorder %s27_s12, %s27_s12 }
   0xe   :  { %p107_p5 = scmp.ne.s32.totalorder %s27_s12, %s106_s16  ;;  %p112_p7 = scmp.lt.s32.totalorder %s106_s16, %s106_s16 }
  0x10   :  { %p113_p8 = por %p112_p7, %p111_p6 }
  0x12   :  { %p114_p9 = pnand %p113_p8, %p107_p5 }
  0x14   :  { %117 = shalt.err (!%p114_p9)
}
  0x15   :  { %29 = dma.hbm_to_vmem [thread:$0]  %s173_s1, 32, %s27_s12, [#allocation6]  }
  0x16   :  { %138 = dma.done.wait [#allocation3], 64  }
  0x17   :  { %139 = vsyncadd [#allocation3], 4294967232 }
  0x18   :  { %140 = dma.done.wait [#allocation6], 32  }
  0x19   :  { %141 = vsyncadd [#allocation6], 4294967264  ;;  %v39_v0 = vlaneseq  ;;  %v146_v1 = vmov 1983009808   ;;  %v37_v7 = vld [vmem:[#allocation5] sm:$0x3] }
  0x1a   :  { %v49_v2 = vunpack.c.l.s4 %v146_v1  ;;  %v36_v12 = vld [vmem:[#allocation2] sm:$0xf]  ;;  %s147_s0 = smov [#allocation7]  }
  0x1b   :  { %v40_v3 = vshrl.u32 %v39_v0, 7  ;;  %s64_s19 = sshll.u32 %s147_s0, 4  ;;  %s65_s19 = int_to_ptr.vmem [resolvable:$true] %s64_s19 }
  0x1c   :  { %v50_v6 = vunpack.c.0.s8 %v49_v2  ;;  %s118_s1 = scalar_lea.vmem %s65_s19, 64  ;;  %p123_p11 = scmp.lt.s32.totalorder %s65_s19, %s65_s19 }
  0x1d   :  { %v41_v4 = vsub.s32 0, %v40_v3  ;;  %v45_v5 = vsub.s32 1, %v40_v3  ;;  %p119_p10 = scmp.ne.s32.totalorder %s65_s19, %s118_s1  ;;  %p124_p12 = scmp.lt.s32.totalorder %s118_s1, %s118_s1 }
  0x1e   :  { %v53_v10 = vsub.s32 %v50_v6, %v40_v3 }
  0x1f   :  { %v42_v8 = vrot.slane %v37_v7, %v41_v4  ;;  %v46_v9 = vrot.slane %v37_v7, %v45_v5  ;;  %p125_p13 = por %p124_p12, %p123_p11 }
  0x21   :  { %v47_v11 = vcombine.low %v42_v8, %v46_v9  ;;  %p126_p0 = pnand %p125_p13, %p119_p10 }
  0x23   :  { %v54_v13 = vrot.slane %v47_v11, %v53_v10 }
  0x25   :  { %v56_v14 = vadd.f32 %v54_v13, %v36_v12 }
  0x27   :  { %57 = vst [vmem:[#allocation7] sm:$0xf] %v56_v14 }
  0x28   :  { %129 = shalt.err (!%p126_p0)
}
  0x29   :  { %67 = dma.vmem_to_hbm [thread:$0]  %s65_s19, 64, %s174_s2, [#allocation4]  }
  0x2a   :  { %142 = dma.done.wait [#allocation4], 64  }
  0x2b   :  { %143 = vsyncadd [#allocation4], 4294967232 }
  0x2c   :  { %71 = vsyncpa [#allocation3], 1 }
  0x2d   :  { %72 = vsyncpa [#allocation6], 1 }
  0x2e   :  { %73 = vsyncpa [#allocation4], 1 }

</bundles_post_ra>
